<compile_context>
chip_gen: v5e
topology: v5e:2x2
jax: 0.10.0
libtpu: 0.0.40
codegen_flags: <defaults>
</compile_context>

<pallas_src>
import functools

import jax
import jax.numpy as jnp
from jax.experimental import pallas as pl
from jax.experimental.pallas import tpu as pltpu

_LANE = 128
_SUBLANE = 8


def _round_up(n, m):
    return ((n + m - 1) // m) * m


def _pick_row_tile(n_rows, d_pad, n_streams, preferred=512,
                   vmem_budget=40 * 1024 * 1024):
    """Largest row tile (multiple of 8, <= preferred) whose double-buffered
    streamed tiles plus the resident weight block fit a conservative VMEM
    budget (sized for v7x's 64 MiB physical VMEM)."""
    resident = 2 * d_pad * d_pad * 2 + 2 * d_pad * 4        # W (bf16) + bias
    tile = min(_round_up(preferred, _SUBLANE), _round_up(n_rows, _SUBLANE))
    while tile > _SUBLANE and (resident + 2 * n_streams * tile * d_pad * 4
                               > vmem_budget):
        tile = _round_up(tile // 2, _SUBLANE)
    return tile, resident + 2 * n_streams * tile * d_pad * 4


def _residual_connection_kernel(alpha_ref, beta_ref,            # SMEM scalars
                                x_ref, w_ref, b_ref, *rest,     # VMEM tiles
                                eps, d_real,
                                keep_threshold, keep_scale, apply_dropout):
    if apply_dropout:
        rbits_ref, o_ref = rest
    else:
        (o_ref,) = rest

    x = x_ref[...]                                   # (TILE_N, D_pad) f32
    d_pad = x.shape[-1]

    # --- LayerNormalization (torch-style: unbiased std, divide by std+eps) ---
    # Padded columns (if any) are zero on input, so they don't perturb sums.
    mean = jnp.sum(x, axis=-1, keepdims=True) * (1.0 / d_real)
    centered = x - mean
    if d_pad != d_real:
        col = jax.lax.broadcasted_iota(jnp.int32, (1, d_pad), 1)
        centered = jnp.where(col < d_real, centered, 0.0)
    var = jnp.sum(centered * centered, axis=-1, keepdims=True) * (1.0 / (d_real - 1))
    std = jnp.sqrt(var)
    # One (TILE_N, 1) divide with alpha folded in, then a full-tile multiply
    # (cheaper than a full-tile divide on the elementwise path).
    inv = alpha_ref[0] / (std + eps)
    normed = centered * inv + beta_ref[0]

    # --- sublayer: linear projection on the MXU (bf16 operands, f32 acc) ---
    y = jnp.dot(normed.astype(jnp.bfloat16), w_ref[...],
                preferred_element_type=jnp.float32)
    y = y + b_ref[...]                               # (1, D_pad) f32 bias

    # --- dropout (training): uint32 threshold compare, inverted scaling ---
    if apply_dropout:
        keep = rbits_ref[...] >= jnp.uint32(keep_threshold)
        y = jnp.where(keep, y * keep_scale, 0.0)

    o_ref[...] = y.astype(o_ref.dtype)


def residual_connection(x, w, b, alpha, beta, *,
                        dropout_rate=0.1, eps=1e-6, training=True, seed=0,
                        preferred_row_tile=512):
    """x: (B, S, D). w: (D, D). b: (D,). alpha/beta: (1,) LayerNorm scalars."""
    B, S, D = x.shape
    N = B * S
    apply_dropout = bool(training) and float(dropout_rate) > 0.0
    n_streams = 3 if apply_dropout else 2            # x, out, (+random bits)

    # Lane-dense layout: pad d_model up to a multiple of 128.
    D_pad = _round_up(D, _LANE)

    # Row tile sized for the tightest VMEM (v7x).
    TILE_N, vmem_est = _pick_row_tile(N, D_pad, n_streams,
                                      preferred=preferred_row_tile)
    N_pad = _round_up(N, TILE_N)
    grid = (N_pad // TILE_N,)

    x_flat = x.reshape(N, D).astype(jnp.float32)
    if (N_pad, D_pad) != (N, D):
        x_flat = jnp.pad(x_flat, ((0, N_pad - N), (0, D_pad - D)))

    w_p = w.astype(jnp.bfloat16)                     # bf16 MXU operand
    b_p = b.astype(jnp.float32).reshape(1, D)
    if D_pad != D:
        w_p = jnp.pad(w_p, ((0, D_pad - D), (0, D_pad - D)))
        b_p = jnp.pad(b_p, ((0, 0), (0, D_pad - D)))

    inputs = [alpha.astype(jnp.float32).reshape(1),
              beta.astype(jnp.float32).reshape(1),
              x_flat, w_p, b_p]
    in_specs = [
        pl.BlockSpec(memory_space=pltpu.MemorySpace.SMEM),     # alpha
        pl.BlockSpec(memory_space=pltpu.MemorySpace.SMEM),     # beta
        pl.BlockSpec((TILE_N, D_pad), lambda i: (i, 0)),       # x rows (streamed)
        pl.BlockSpec((D_pad, D_pad), lambda i: (0, 0)),        # W (resident)
        pl.BlockSpec((1, D_pad), lambda i: (0, 0)),            # b (resident)
    ]

    keep_threshold = 0
    keep_scale = 1.0
    if apply_dropout:
        p = float(dropout_rate)
        keep_threshold = min(int(round(p * 4294967296.0)), 4294967295)
        keep_scale = 1.0 / (1.0 - p)
        # TODO(synk): on hardware-only deployments this streamed input can be
        # replaced by in-kernel pltpu.prng_seed(seed + pl.program_id(0)) +
        # prng_random_bits; host-side bits are used so the kernel also runs
        # under the Pallas interpreter (prng_seed has no CPU lowering).
        rbits = jax.random.bits(jax.random.PRNGKey(seed), (N_pad, D_pad),
                                dtype=jnp.uint32)
        inputs.append(rbits)
        in_specs.append(pl.BlockSpec((TILE_N, D_pad), lambda i: (i, 0)))

    kernel = functools.partial(
        _residual_connection_kernel,
        eps=float(eps), d_real=D,
        keep_threshold=keep_threshold, keep_scale=keep_scale,
        apply_dropout=apply_dropout)

    bytes_accessed = (2 * N_pad * D_pad * 4                     # x in + out
                      + D_pad * D_pad * 2 + D_pad * 4           # W + b
                      + (N_pad * D_pad * 4 if apply_dropout else 0))
    cost = pl.CostEstimate(
        flops=2 * N_pad * D_pad * D_pad + 8 * N_pad * D_pad,
        transcendentals=N_pad,                                  # sqrt per row
        bytes_accessed=bytes_accessed)

    vmem_limit = int(min(max(int(vmem_est * 1.25), 32 * 1024 * 1024),
                         60 * 1024 * 1024))

    out = pl.pallas_call(
        kernel,
        grid=grid,
        in_specs=in_specs,
        out_specs=pl.BlockSpec((TILE_N, D_pad), lambda i: (i, 0)),
        out_shape=jax.ShapeDtypeStruct((N_pad, D_pad), x.dtype),
        compiler_params=pltpu.CompilerParams(
            dimension_semantics=("parallel",),
            vmem_limit_bytes=vmem_limit),
        cost_estimate=cost,
    )(*inputs)

    return out[:N, :D].reshape(B, S, D)


def _reference_no_dropout(x, w, b, alpha, beta, eps=1e-6):
    mean = jnp.mean(x, axis=-1, keepdims=True)
    std = jnp.std(x, axis=-1, keepdims=True, ddof=1)
    normed = alpha * ((x - mean) / (std + eps)) + beta
    return normed @ w + b


if __name__ == "__main__":
    key = jax.random.PRNGKey(0)
    k_x, k_w, k_b = jax.random.split(key, 3)

    B, S, D = 2, 8, 32
    x = jax.random.normal(k_x, (B, S, D), dtype=jnp.float32)

    # Deterministic parameter init (synthetic, no checkpoint load):
    # LayerNormalization params exactly as in __init__: alpha=1, bias=0.
    alpha = jnp.ones((1,), dtype=jnp.float32)
    beta = jnp.zeros((1,), dtype=jnp.float32)
    # Sublayer (linear) params.
    w = jax.random.normal(k_w, (D, D), dtype=jnp.float32) * (1.0 / jnp.sqrt(D))
    b = jax.random.normal(k_b, (D,), dtype=jnp.float32) * 0.01

    # Eval-mode sanity check against a pure-JAX reference (bf16-matmul tol).
    out_eval = residual_connection(x, w, b, alpha, beta,
                                   dropout_rate=0.1, training=False, seed=0)
    jax.block_until_ready(out_eval)
    ref_eval = _reference_no_dropout(x, w, b, alpha, beta)
    assert out_eval.shape == (B, S, D)
    assert float(jnp.max(jnp.abs(out_eval - ref_eval))) < 0.2

    # Training-mode (dropout) run.
    out = residual_connection(x, w, b, alpha, beta,
                              dropout_rate=0.1, training=True, seed=0)
    jax.block_until_ready(out)
    assert out.shape == (B, S, D) and out.dtype == jnp.float32
    assert bool(jnp.all(jnp.isfinite(out)))
    print("KERNEL_OK")
</pallas_src>

<mosaic_0001>
module attributes {stable_mosaic.version = 11 : i64} {
  func.func @_residual_connection_kernel(%arg0: i32, %arg1: memref<1xf32, #tpu.memory_space<smem>>, %arg2: memref<1xf32, #tpu.memory_space<smem>>, %arg3: memref<16x128xf32, #tpu.memory_space<vmem>>, %arg4: memref<128x128xbf16, #tpu.memory_space<vmem>>, %arg5: memref<1x128xf32, #tpu.memory_space<vmem>>, %arg6: memref<16x128xf32, #tpu.memory_space<vmem>>) attributes {dimension_semantics = [#tpu.dimension_semantics<parallel>], iteration_bounds = array<i64: 1>, scalar_prefetch = 0 : i64, scratch_operands = 0 : i64, tpu.core_type = #tpu.core_type<tc>, window_params = [{transform_indices = @transform_0, window_bounds = array<i64: 1>}, {transform_indices = @transform_1, window_bounds = array<i64: 1>}, {transform_indices = @transform_2, window_bounds = array<i64: 16, 128>}, {pipeline_mode = #tpu.pipeline_mode<synchronous>, transform_indices = @transform_3, window_bounds = array<i64: 128, 128>}, {pipeline_mode = #tpu.pipeline_mode<synchronous>, transform_indices = @transform_4, window_bounds = array<i64: 1, 128>}, {transform_indices = @transform_5, window_bounds = array<i64: 16, 128>}]} {
    %c0 = arith.constant 0 : index
    %c0_0 = arith.constant 0 : index
    %0 = vector.load %arg3[%c0, %c0_0] : memref<16x128xf32, #tpu.memory_space<vmem>>, vector<16x128xf32>
    %cst = arith.constant dense<0.000000e+00> : vector<16xf32>
    %1 = vector.multi_reduction <add>, %0, %cst [1] : vector<16x128xf32> to vector<16xf32>
    %2 = vector.shape_cast %1 : vector<16xf32> to vector<16x1xf32>
    %cst_1 = arith.constant 3.125000e-02 : f32
    %3 = vector.broadcast %cst_1 : f32 to vector<16x1xf32>
    %4 = arith.mulf %2, %3 : vector<16x1xf32>
    %5 = vector.broadcast %4 : vector<16x1xf32> to vector<16x128xf32>
    %6 = arith.subf %0, %5 : vector<16x128xf32>
    %7 = tpu.iota {dimensions = array<i32: 1>} : vector<1x128xi32>
    %c32_i32 = arith.constant 32 : i32
    %8 = vector.broadcast %c32_i32 : i32 to vector<1x128xi32>
    %9 = arith.cmpi slt, %7, %8 : vector<1x128xi32>
    %cst_2 = arith.constant 0.000000e+00 : f32
    %10 = vector.shape_cast %9 : vector<1x128xi1> to vector<1x128xi1>
    %11 = vector.broadcast %10 : vector<1x128xi1> to vector<16x128xi1>
    %12 = vector.broadcast %cst_2 : f32 to vector<16x128xf32>
    %13 = arith.select %11, %6, %12 : vector<16x128xi1>, vector<16x128xf32>
    %14 = arith.mulf %13, %13 : vector<16x128xf32>
    %cst_3 = arith.constant dense<0.000000e+00> : vector<16xf32>
    %15 = vector.multi_reduction <add>, %14, %cst_3 [1] : vector<16x128xf32> to vector<16xf32>
    %16 = vector.shape_cast %15 : vector<16xf32> to vector<16x1xf32>
    %cst_4 = arith.constant 0.0322580636 : f32
    %17 = vector.broadcast %cst_4 : f32 to vector<16x1xf32>
    %18 = arith.mulf %16, %17 : vector<16x1xf32>
    %19 = math.sqrt %18 : vector<16x1xf32>
    %c0_5 = arith.constant 0 : index
    %20 = memref.load %arg1[%c0_5] : memref<1xf32, #tpu.memory_space<smem>>
    %cst_6 = arith.constant 9.99999997E-7 : f32
    %21 = vector.broadcast %cst_6 : f32 to vector<16x1xf32>
    %22 = arith.addf %19, %21 : vector<16x1xf32>
    %23 = vector.broadcast %20 : f32 to vector<16x1xf32>
    %24 = arith.divf %23, %22 : vector<16x1xf32>
    %25 = vector.broadcast %24 : vector<16x1xf32> to vector<16x128xf32>
    %26 = arith.mulf %13, %25 : vector<16x128xf32>
    %c0_7 = arith.constant 0 : index
    %27 = memref.load %arg2[%c0_7] : memref<1xf32, #tpu.memory_space<smem>>
    %28 = vector.broadcast %27 : f32 to vector<16x128xf32>
    %29 = arith.addf %26, %28 : vector<16x128xf32>
    %30 = arith.truncf %29 : vector<16x128xf32> to vector<16x128xbf16>
    %c0_8 = arith.constant 0 : index
    %c0_9 = arith.constant 0 : index
    %31 = vector.load %arg4[%c0_8, %c0_9] : memref<128x128xbf16, #tpu.memory_space<vmem>>, vector<128x128xbf16>
    %cst_10 = arith.constant dense<0.000000e+00> : vector<16x128xf32>
    %32 = tpu.matmul %30, %31, %cst_10 {dimension_numbers = #tpu.dot_dimension_numbers<[1], [0], [0], [1], [0, 0, 1, 1], [], []>} : vector<16x128xbf16>, vector<128x128xbf16>, vector<16x128xf32> -> vector<16x128xf32>
    %c0_11 = arith.constant 0 : index
    %c0_12 = arith.constant 0 : index
    %33 = vector.load %arg5[%c0_11, %c0_12] : memref<1x128xf32, #tpu.memory_space<vmem>>, vector<1x128xf32>
    %34 = vector.broadcast %33 : vector<1x128xf32> to vector<16x128xf32>
    %35 = arith.addf %32, %34 : vector<16x128xf32>
    %c0_13 = arith.constant 0 : index
    %c0_14 = arith.constant 0 : index
    %36 = vector.load %arg6[%c0_13, %c0_14] : memref<16x128xf32, #tpu.memory_space<vmem>>, vector<16x128xf32>
    tpu.vector_store %arg6[%c0_13, %c0_14], %35 {strides = array<i32>} : memref<16x128xf32, #tpu.memory_space<vmem>>, vector<16x128xf32>,
    return
  }
  func.func @transform_0(%arg0: i32) -> i32 {
    %c0_i32 = arith.constant 0 : i32
    %c0_i32_0 = arith.constant 0 : i32
    return %c0_i32 : i32
  }
  func.func @transform_1(%arg0: i32) -> i32 {
    %c0_i32 = arith.constant 0 : i32
    %c0_i32_0 = arith.constant 0 : i32
    return %c0_i32 : i32
  }
  func.func @transform_2(%arg0: i32) -> (i32, i32) {
    %c0_i32 = arith.constant 0 : i32
    %c0_i32_0 = arith.constant 0 : i32
    return %arg0, %c0_i32 : i32, i32
  }
  func.func @transform_3(%arg0: i32) -> (i32, i32) {
    %c0_i32 = arith.constant 0 : i32
    %c0_i32_0 = arith.constant 0 : i32
    %c0_i32_1 = arith.constant 0 : i32
    return %c0_i32, %c0_i32_0 : i32, i32
  }
  func.func @transform_4(%arg0: i32) -> (i32, i32) {
    %c0_i32 = arith.constant 0 : i32
    %c0_i32_0 = arith.constant 0 : i32
    %c0_i32_1 = arith.constant 0 : i32
    return %c0_i32, %c0_i32_0 : i32, i32
  }
  func.func @transform_5(%arg0: i32) -> (i32, i32) {
    %c0_i32 = arith.constant 0 : i32
    %c0_i32_0 = arith.constant 0 : i32
    return %arg0, %c0_i32 : i32, i32
  }
}

</mosaic_0001>

<bundles_post_ra>
// kernel: tpu_custom_call.1
= control target key start
LH: loop header
LB: loop body
LE: loop exit
PB: predicated region body
PF: predicated region fallthrough
CT: control target
= control target key end

     0   :  { %12 = vsyncpa [#allocation5], 0  ;;  %s454_s0 = inlined_call_operand.<no memory space> [shape: f32[1], index: 0, kind: input, shape index: {}]   ;;  %s455_s1 = inlined_call_operand.<no memory space> [shape: f32[1], index: 1, kind: input, shape index: {}]   ;;  %s456_s2 = inlined_call_operand.hbm [shape: f32[16,128], index: 2, kind: input, shape index: {}]   ;;  %s457_s3 = inlined_call_operand.hbm [shape: bf16[128,128], index: 3, kind: input, shape index: {}]   ;;  %s458_s4 = inlined_call_operand.vmem [shape: f32[1,128], index: 4, kind: input, shape index: {}]   ;;  %s459_s5 = inlined_call_operand.hbm [shape: f32[16,128], index: 5, kind: output, shape index: {}]  }
   0x1   :  { %13 = vsyncpa [#allocation8], 0 }
   0x2   :  { %14 = vsyncpa [#allocation6], 0  ;;  %s23_s20 = sshll.u32 %s456_s2, 4  ;;  %s383_s21 = smov [#allocation4]   ;;  %s24_s20 = int_to_ptr.hbm [resolvable:$true] %s23_s20 }
   0x3   :  { %s25_s22 = sshll.u32 %s383_s21, 4  ;;  %s36_s25 = sshll.u32 %s457_s3, 4  ;;  %s26_s22 = int_to_ptr.vmem [resolvable:$true] %s25_s22  ;;  %s37_s25 = int_to_ptr.hbm [resolvable:$true] %s36_s25 }
   0x4   :  { %s384_s26 = smov 128   ;;  %s385_s27 = smov 8  }
   0x5   :  { %31 = dma.hbm_to_vmem [thread:$0]  %s24_s20, 256, %s26_s22, [#allocation5], %s384_s26, %s384_s26, %s385_s27  }
   0x6   :  { %s386_s28 = smov [#allocation7]   ;;  %s387_s30 = smov 64  }
   0x7   :  { %s38_s29 = sshll.u32 %s386_s28, 4  ;;  %s388_s2 = smov 4   ;;  %s39_s29 = int_to_ptr.vmem [resolvable:$true] %s38_s29 }
   0x8   :  { %44 = dma.hbm_to_vmem [thread:$0]  %s37_s25, 1024, %s39_s29, [#allocation8], %s387_s30, %s387_s30, %s388_s2  }
   0x9   :  { %377 = dma.done.wait [#allocation5], 256  }
   0xa   :  { %378 = vsyncadd [#allocation5], 4294967040 }
   0xb   :  { %379 = dma.done.wait [#allocation8], 1024  }
   0xc   :  { %380 = vsyncadd [#allocation8], 4294966272  ;;  %v55_v0 = vld [vmem:[#allocation4] sm:$0xff]  ;;  %v56_v1 = vld [vmem:[#allocation4 + $0x8] sm:$0xff]  ;;  %v65_v2 = vlaneseq  ;;  %v107_v60 = vstv %s454_s0  ;;  %s389_s10 = smov [#allocation9]   ;;  %s235_s14 = sshll.u32 %s459_s5, 4  ;;  %s236_s14 = int_to_ptr.hbm [resolvable:$true] %s235_s14 }
   0xd   :  { %57 = vadd.xlane.f32.xlu0 %v55_v0  ;;  %v288_v14 = vld [vmem:[#allocation7 + $0x38] sm:$0xff]  ;;  %v287_v15 = vld [vmem:[#allocation7 + $0x30] sm:$0xff]  ;;  %v286_v17 = vld [vmem:[#allocation7 + $0x28] sm:$0xff]  ;;  %s233_s11 = sshll.u32 %s389_s10, 4  ;;  %s234_s11 = int_to_ptr.vmem [resolvable:$true] %s233_s11 }
   0xe   :  { %v66_v3 = vand.u32 127, %v65_v2  ;;  %213 = vmatpush.bf16.msra.mxu0 %v288_v14  ;;  %v285_v19 = vld [vmem:[#allocation7 + $0x20] sm:$0xff]  ;;  %v284_v21 = vld [vmem:[#allocation7 + $0x18] sm:$0xff]  ;;  %v283_v26 = vld [vmem:[#allocation7 + $0x10] sm:$0xff] }
   0xf   :  { %v282_v29 = vld [vmem:[#allocation7 + $0x8] sm:$0xff]  ;;  %v281_v35 = vld [vmem:[#allocation7] sm:$0xff] }
  0x10   :  { %vm67_vm0 = vcmp.lt.s32.totalorder %v66_v3, 32 }
  0x12   :  { %214 = vmatpush.bf16.msra.mxu0 %v287_v15  ;;  %v296_v15 = vld [vmem:[%s458_s4] ss:$0 sm:$0xff] }
  0x15   :  { %59 = vadd.xlane.f32.xlu0 %v56_v1 }
  0x16   :  { %215 = vmatpush.bf16.msra.mxu0 %v286_v17 }
  0x1a   :  { %216 = vmatpush.bf16.msra.mxu0 %v285_v19 }
  0x1e   :  { %217 = vmatpush.bf16.msra.mxu0 %v284_v21 }
  0x22   :  { %218 = vmatpush.bf16.msra.mxu0 %v283_v26 }
  0x26   :  { %219 = vmatpush.bf16.msra.mxu0 %v282_v29 }
  0x2a   :  { %220 = vmatpush.bf16.msra.mxu0 %v281_v35 }
  0x80   :  { %v58_v4 = vpop.xlane.xlu0 %57 }
  0x81   :  { %v61_v5 = vmul.f32 0.03125, %v58_v4 }
  0x83   :  { %v63_v6 = vsub.f32 %v55_v0, %v61_v5 }
  0x85   :  { %v429_v7 = vsel %vm67_vm0, %v63_v6, 0.0 }
  0x86   :  { %v72_v8 = vmul.f32 %v429_v7, %v429_v7 }
  0x88   :  { %74 = vadd.xlane.f32.xlu1 %v72_v8  ;;  %v60_v9 = vpop.xlane.xlu0 %59 }
  0x89   :  { %v62_v10 = vmul.f32 0.03125, %v60_v9  ;;  %v141_v9 = vstv %s455_s1 }
  0x8b   :  { %v64_v11 = vsub.f32 %v56_v1, %v62_v10 }
  0x8d   :  { %v433_v12 = vsel %vm67_vm0, %v64_v11, 0.0 }
  0x8e   :  { %v73_v13 = vmul.f32 %v433_v12, %v433_v12 }
  0x90   :  { %76 = vadd.xlane.f32.xlu1 %v73_v13 }
  0xfb   :  { %v75_v16 = vpop.xlane.xlu1 %74 }
  0xfc   :  { %v78_v18 = vmul.f32 0.032258064, %v75_v16 }
  0xfe   :  { %297 = vrsqrt.f32 %v78_v18  ;;  %vm87_vm1 = vcmp.eq.f32.partialorder %v78_v18, inf  ;;  %v90_v36 = vand.u32 2147483648, %v78_v18  ;;  %vm89_vm2 = vcmp.eq.f32.partialorder %v78_v18, 0.0 }
 0x103   :  { %v77_v20 = vpop.xlane.xlu1 %76 }
 0x104   :  { %v298_v22 = vpop.eup %297  ;;  %v79_v23 = vmul.f32 0.032258064, %v77_v20 }
 0x105   :  { %v81_v24 = vmul.f32 %v298_v22, %v78_v18 }
 0x106   :  { %299 = vrsqrt.f32 %v79_v23  ;;  %vm99_vm3 = vcmp.eq.f32.partialorder %v79_v23, inf  ;;  %v102_v44 = vand.u32 2147483648, %v79_v23  ;;  %vm101_vm4 = vcmp.eq.f32.partialorder %v79_v23, 0.0 }
 0x107   :  { %v82_v25 = vmul.f32 %v298_v22, %v81_v24 }
 0x109   :  { %v83_v27 = vmul.f32 0.5, %v82_v25 }
 0x10b   :  { %v84_v28 = vsub.f32 1.5, %v83_v27 }
 0x10c   :  { %v300_v30 = vpop.eup %299 }
 0x10d   :  { %v85_v31 = vmul.f32 %v298_v22, %v84_v28  ;;  %v93_v32 = vmul.f32 %v300_v30, %v79_v23 }
 0x10f   :  { %v86_v33 = vmul.f32 %v85_v31, %v78_v18  ;;  %v94_v34 = vmul.f32 %v300_v30, %v93_v32 }
 0x111   :  { %v88_v37 = vsel %vm87_vm1, %v78_v18, %v86_v33  ;;  %v95_v38 = vmul.f32 0.5, %v94_v34 }
 0x112   :  { %v91_v39 = vsel %vm89_vm2, %v90_v36, %v88_v37 }
 0x113   :  { %v96_v40 = vsub.f32 1.5, %v95_v38  ;;  %v105_v41 = vadd.f32 1e-06, %v91_v39 }
 0x115   :  { %v97_v42 = vmul.f32 %v300_v30, %v96_v40  ;;  %301 = vrcp.f32 %v105_v41  ;;  %v119_v52 = vand.u32 2147483648, %v105_v41  ;;  %vm113_vm6 = vweird.f32 %v105_v41 }
 0x116   :  { %v117_v54 = vand.u32 2147483647, %v105_v41 }
 0x117   :  { %v98_v43 = vmul.f32 %v97_v42, %v79_v23  ;;  %v120_v58 = vor.u32 1.1754944e-38, %v119_v52 }
 0x118   :  { %vm118_vm8 = vcmp.eq.f32.partialorder %v117_v54, 8.507059e+37 }
 0x119   :  { %v100_v45 = vsel %vm99_vm3, %v79_v23, %v98_v43 }
 0x11a   :  { %v103_v46 = vsel %vm101_vm4, %v102_v44, %v100_v45 }
 0x11b   :  { %v302_v47 = vpop.eup %301  ;;  %v106_v48 = vadd.f32 1e-06, %v103_v46 }
 0x11c   :  { %v109_v49 = vmul.f32 %v302_v47, %v105_v41  ;;  %vm114_vm5 = vweird.f32 %v302_v47 }
 0x11d   :  { %303 = vrcp.f32 %v106_v48  ;;  %vm115_vm7 = vmor %vm113_vm6, %vm114_vm5  ;;  %v134_v62 = vand.u32 2147483648, %v106_v48  ;;  %v132_v0 = vand.u32 2147483647, %v106_v48  ;;  %vm128_vm10 = vweird.f32 %v106_v48 }
 0x11e   :  { %v110_v50 = vsub.f32 1.0, %v109_v49 }
 0x11f   :  { %v135_v3 = vor.u32 1.1754944e-38, %v134_v62  ;;  %vm133_vm12 = vcmp.eq.f32.partialorder %v132_v0, 8.507059e+37 }
 0x120   :  { %v111_v51 = vmul.f32 %v302_v47, %v110_v50 }
 0x122   :  { %v112_v53 = vadd.f32 %v302_v47, %v111_v51 }
 0x123   :  { %v304_v55 = vpop.eup %303 }
 0x124   :  { %v116_v56 = vsel %vm115_vm7, %v302_v47, %v112_v53  ;;  %v124_v57 = vmul.f32 %v304_v55, %v106_v48  ;;  %vm129_vm9 = vweird.f32 %v304_v55 }
 0x125   :  { %v121_v61 = vsel %vm118_vm8, %v120_v58, %v116_v56  ;;  %vm130_vm11 = vmor %vm128_vm10, %vm129_vm9 }
 0x126   :  { %v125_v59 = vsub.f32 1.0, %v124_v57  ;;  %v122_v1 = vmul.f32 %v121_v61, %v107_v60 }
 0x128   :  { %v126_v63 = vmul.f32 %v304_v55, %v125_v59  ;;  %v138_v8 = vmul.f32 %v122_v1, %v429_v7 }
 0x12a   :  { %v127_v2 = vadd.f32 %v304_v55, %v126_v63  ;;  %v142_v11 = vadd.f32 %v141_v9, %v138_v8 }
 0x12c   :  { %v131_v4 = vsel %vm130_vm11, %v304_v55, %v127_v2 }
 0x12d   :  { %v136_v5 = vsel %vm133_vm12, %v135_v3, %v131_v4 }
 0x12e   :  { %v137_v6 = vmul.f32 %v136_v5, %v107_v60 }
 0x130   :  { %v139_v10 = vmul.f32 %v137_v6, %v433_v12 }
 0x132   :  { %v143_v13 = vadd.f32 %v141_v9, %v139_v10 }
 0x134   :  { %v144_v14 = vpack.c.bf16 %v143_v13, %v142_v11 }
 0x136   :  { %221 = vmatmul.bf16.vlgmr.msra.gmra.mxu0 %v144_v14 }
 0x1b3   :  { %v222_v16 = vpop.f32.mrf.mxu0 }
 0x1b4   :  { %v223_v17 = vadd.f32 %v296_v15, %v222_v16 }
 0x1b6   :  { %227 = vst [vmem:[#allocation9] sm:$0xff] %v223_v17 }
 0x1bb   :  { %v224_v7 = vpop.f32.mrf.mxu0 }
 0x1bc   :  { %v225_v18 = vadd.f32 %v296_v15, %v224_v7 }
 0x1be   :  { %228 = vst [vmem:[#allocation9 + $0x8] sm:$0xff] %v225_v18 }
 0x1bf   :  { %241 = dma.vmem_to_hbm [thread:$0]  %s234_s11, 256, %s236_s14, [#allocation6], %s384_s26, %s384_s26, %s385_s27  }
 0x1c0   :  { %381 = dma.done.wait [#allocation6], 256  }
 0x1c1   :  { %382 = vsyncadd [#allocation6], 4294967040 }
 0x1c2   :  { %246 = vsyncpa [#allocation5], 1 }
 0x1c3   :  { %247 = vsyncpa [#allocation8], 1 }
 0x1c4   :  { %248 = vsyncpa [#allocation6], 1 }

</bundles_post_ra>
